<compile_context>
chip_gen: v7x
topology: tpu7x:2x2x1
jax: 0.10.0
libtpu: 0.0.40
codegen_flags: <defaults>
</compile_context>

<pallas_src>
import functools
import math

import jax
import jax.numpy as jnp
from jax.experimental import pallas as pl
from jax.experimental.pallas import tpu as pltpu

_TARGET_TILE_BYTES = 4 << 20   # ~4 MiB input tile (85%+ of HBM roofline regime)
_LANE = 128
_MIN_GRID_STEPS = 4            # keep both v7x TensorCores busy on short grids
_VMEM_FLOOR = 16 << 20         # never request less than the v5e scoped default
_VMEM_CAP = 60 << 20           # stay under v7x's 64 MiB physical VMEM


def bias_add_kernel(x_ref, b_ref, o_ref):
    # x_ref: (tm, tl) activation tile, b_ref: (tm, 1) per-row bias column.
    # VPU broadcast of the bias column across the lane axis.
    o_ref[...] = x_ref[...] + b_ref[...]


def _sublane(itemsize):
    return 32 if itemsize == 1 else (16 if itemsize == 2 else 8)


def _pick_tiles(M, L, C, itemsize):
    """Choose (tm, tl, resident_bias) for the (M, L) = (N*C, H*W) view."""
    sub = _sublane(itemsize)
    lcm_cs = math.lcm(C, sub)
    target = _TARGET_TILE_BYTES

    # Lane tile: full extent unless L is a (huge) 128-multiple worth splitting.
    if L % _LANE != 0:
        tl = L  # full-extent exemption; see lane-density TODO above.
    else:
        strip = max(_LANE, (target // (sub * itemsize)) // _LANE * _LANE)
        tl = min(L, strip)

    def rows_for(unit):
        r = (target // max(tl * itemsize, 1)) // unit * unit
        return max(r, unit)

    # Prefer C-aligned row tiles so one small bias column can stay resident.
    resident = lcm_cs * tl * itemsize <= 2 * target
    unit = lcm_cs if resident else sub
    tm = rows_for(unit)

    if tm >= M:
        tm = M
        resident = True  # single row tile starting at row 0 -> r % C mapping holds
    else:
        # v7x megacore: aim for >= _MIN_GRID_STEPS grid steps when big enough.
        steps = pl.cdiv(M, tm) * pl.cdiv(L, tl)
        if steps < _MIN_GRID_STEPS and M >= _MIN_GRID_STEPS * unit:
            tm = min(tm, max(unit, (M // _MIN_GRID_STEPS) // unit * unit))

    return tm, tl, resident


@functools.partial(jax.jit, static_argnames=("donate_x",))
def learnable_bias(x_nchw, bias_1c11, *, donate_x=False):
    """x_nchw: (N, C, H, W); bias_1c11: (1, C, 1, 1). Returns x + bias (broadcast)."""
    N, C, H, W = x_nchw.shape
    M, L = N * C, H * W
    x_dtype = x_nchw.dtype
    itemsize = jnp.dtype(x_dtype).itemsize
    out_dtype = jnp.result_type(x_dtype, bias_1c11.dtype)  # torch promotion semantics
    out_itemsize = jnp.dtype(out_dtype).itemsize

    # Pure reshape -- no HBM data movement; lane axis = H*W (lane-dense).
    x2d = x_nchw.reshape(M, L)

    tm, tl, resident = _pick_tiles(M, L, C, itemsize)
    grid = (pl.cdiv(M, tm), pl.cdiv(L, tl))

    bias_col = bias_1c11.reshape(C, 1)
    if resident:
        # Small (tm, 1) column, DMA'd into VMEM once and reused by every grid
        # step: tile starts are multiples of C, so row r always maps to channel
        # r % C (including the partial last row tile).
        b2d = jnp.tile(bias_col, (tm // C, 1))
        b_spec = pl.BlockSpec((tm, 1), lambda i, j: (0, 0))
    else:
        # Fallback for degenerate C (huge lcm(C, sublane)): full per-row column,
        # re-fetched per row tile.
        b2d = jnp.tile(bias_col, (N, 1))
        b_spec = pl.BlockSpec((tm, 1), lambda i, j: (i, 0))
    bias_itemsize = jnp.dtype(b2d.dtype).itemsize

    # Explicit scoped-VMEM budget: double-buffered in+out tiles + bias + margin.
    working = 2 * tm * tl * (itemsize + out_itemsize) + 4 * tm * bias_itemsize
    vmem_limit = int(min(max(working + (1 << 20), _VMEM_FLOOR), _VMEM_CAP))

    cost = pl.CostEstimate(
        flops=M * L,
        transcendentals=0,
        bytes_accessed=M * L * (itemsize + out_itemsize) + b2d.size * bias_itemsize,
    )

    # Aliasing x with the output is only legal when no dtype promotion happens.
    aliases = {0: 0} if (donate_x and out_dtype == x_dtype) else {}

    out2d = pl.pallas_call(
        bias_add_kernel,
        out_shape=jax.ShapeDtypeStruct((M, L), out_dtype),
        grid=grid,
        in_specs=[
            pl.BlockSpec((tm, tl), lambda i, j: (i, j)),  # activation tile
            b_spec,                                        # bias column
        ],
        out_specs=pl.BlockSpec((tm, tl), lambda i, j: (i, j)),
        compiler_params=pltpu.CompilerParams(
            dimension_semantics=("parallel", "parallel"),
            vmem_limit_bytes=vmem_limit,
        ),
        cost_estimate=cost,
        input_output_aliases=aliases,
    )(x2d, b2d)

    return out2d.reshape(N, C, H, W)


if __name__ == "__main__":
    key = jax.random.PRNGKey(0)
    kx, kb = jax.random.split(key)

    N, C, H, W = 2, 4, 16, 16
    x = jax.random.normal(kx, (N, C, H, W), dtype=jnp.float32)

    # nn.Parameter(torch.zeros(1, out_chn, 1, 1)) -- same shape; non-zero init
    # so the broadcast path is actually exercised.
    bias = jax.random.normal(kb, (1, C, 1, 1), dtype=jnp.float32)

    out = learnable_bias(x, bias)
    out = jax.block_until_ready(out)

    ref = x + bias  # broadcast reference (matches torch expand_as + add)
    assert out.shape == (N, C, H, W)
    assert out.dtype == ref.dtype
    assert jnp.allclose(out, ref, atol=1e-6, rtol=1e-6)

    print("KERNEL_OK")
</pallas_src>

<mosaic_0001>
module attributes {stable_mosaic.version = 11 : i64} {
  func.func @bias_add_kernel(%arg0: i32, %arg1: i32, %arg2: memref<8x256xf32, #tpu.memory_space<vmem>>, %arg3: memref<8x1xf32, #tpu.memory_space<vmem>>, %arg4: memref<8x256xf32, #tpu.memory_space<vmem>>) attributes {dimension_semantics = [#tpu.dimension_semantics<parallel>, #tpu.dimension_semantics<parallel>], iteration_bounds = array<i64: 1, 1>, scalar_prefetch = 0 : i64, scratch_operands = 0 : i64, tpu.core_type = #tpu.core_type<tc>, window_params = [{transform_indices = @transform_0, window_bounds = array<i64: 8, 256>}, {pipeline_mode = #tpu.pipeline_mode<synchronous>, transform_indices = @transform_1, window_bounds = array<i64: 8, 1>}, {transform_indices = @transform_2, window_bounds = array<i64: 8, 256>}]} {
    %c0 = arith.constant 0 : index
    %c0_0 = arith.constant 0 : index
    %0 = vector.load %arg2[%c0, %c0_0] : memref<8x256xf32, #tpu.memory_space<vmem>>, vector<8x256xf32>
    %c0_1 = arith.constant 0 : index
    %c0_2 = arith.constant 0 : index
    %1 = vector.load %arg3[%c0_1, %c0_2] : memref<8x1xf32, #tpu.memory_space<vmem>>, vector<8x1xf32>
    %2 = vector.broadcast %1 : vector<8x1xf32> to vector<8x256xf32>
    %3 = arith.addf %0, %2 : vector<8x256xf32>
    %c0_3 = arith.constant 0 : index
    %c0_4 = arith.constant 0 : index
    %4 = vector.load %arg4[%c0_3, %c0_4] : memref<8x256xf32, #tpu.memory_space<vmem>>, vector<8x256xf32>
    tpu.vector_store %arg4[%c0_3, %c0_4], %3 {strides = array<i32>} : memref<8x256xf32, #tpu.memory_space<vmem>>, vector<8x256xf32>,
    return
  }
  func.func @transform_0(%arg0: i32, %arg1: i32) -> (i32, i32) {
    %c0_i32 = arith.constant 0 : i32
    return %arg0, %arg1 : i32, i32
  }
  func.func @transform_1(%arg0: i32, %arg1: i32) -> (i32, i32) {
    %c0_i32 = arith.constant 0 : i32
    %c0_i32_0 = arith.constant 0 : i32
    %c0_i32_1 = arith.constant 0 : i32
    return %c0_i32, %c0_i32_0 : i32, i32
  }
  func.func @transform_2(%arg0: i32, %arg1: i32) -> (i32, i32) {
    %c0_i32 = arith.constant 0 : i32
    return %arg0, %arg1 : i32, i32
  }
}

</mosaic_0001>

<bundles_post_ra>
// kernel: learnable_bias.1
= control target key start
LH: loop header
LB: loop body
LE: loop exit
PB: predicated region body
PF: predicated region fallthrough
CT: control target
= control target key end

     0   :  { %v29_v0 = vmov 0   ;;  %s60_s1 = inlined_call_operand.vmem [shape: f32[8,1], index: 1, kind: input, shape index: {}]   ;;  %s61_s0 = inlined_call_operand.vmem [shape: f32[8,256], index: 0, kind: input, shape index: {}]   ;;  %s62_s2 = inlined_call_operand.vmem [shape: f32[8,256], index: 2, kind: output, shape index: {}]  }
   0x1   :  { %28 = vset.pattern.permute.xlu0 %v29_v0  ;;  %v13_v1 = vld [vmem:[%s60_s1] sm:$0xff]  ;;  %v12_v3 = vld [vmem:[%s61_s0 + $0x8] sm:$0xff] }
   0x2   :  { %16 = vperm.xlu0 %28, %v13_v1   ;;  %v11_v2 = vld [vmem:[%s61_s0] sm:$0xff] }
  0x81   :  { %v17_v4 = vpop.permute.xlu0 %16 }
  0x82   :  { %v19_v5 = vadd.f32 %v17_v4, %v11_v2  ;;  %v20_v6 = vadd.f32 %v17_v4, %v12_v3 }
  0x84   :  { %21 = vst [vmem:[%s62_s2] sm:$0xff] %v19_v5  ;;  %22 = vst [vmem:[%s62_s2 + $0x8] sm:$0xff] %v20_v6 }

</bundles_post_ra>
